<compile_context>
chip_gen: v7x
topology: tpu7x:2x2x1
jax: 0.10.0
libtpu: 0.0.40
codegen_flags: <defaults>
</compile_context>

<pallas_src>
import jax
import jax.numpy as jnp
from jax.experimental import pallas as pl
from jax.experimental.pallas import tpu as pltpu

_LANE = 128
_SUBLANE = 8


def _round_up(n, m):
    return ((n + m - 1) // m) * m


def xor_mlp_kernel(params_ref, x_ref, o_ref):
    # params_ref: (33,) f32 in SMEM (scalar-prefetched), packed as
    #   [ w1[0, :]  (8) ] -> [0, 8)
    #   [ w1[1, :]  (8) ] -> [8, 16)
    #   [ -b1       (8) ] -> [16, 24)
    #   [ w2        (8) ] -> [24, 32)
    #   [ b2 + sum_f w2[f]*b1[f] ] -> [32]
    # x_ref: (2, r, 128) f32 in VMEM   (feature, batch-rows, batch-lanes)
    # o_ref: (r, 128)    f32 in VMEM
    x0 = x_ref[0]  # (r, 128) full vregs
    x1 = x_ref[1]  # (r, 128)

    # Accumulate layer-2 output directly; start from the folded bias.
    z = jnp.full(o_ref.shape, params_ref[32], dtype=jnp.float32)

    # Layer 1 as 8 broadcast FMAs; relu folded into the max against -b1[f];
    # layer 2 folded into the running accumulation.
    for f in range(8):
        h = jnp.maximum(params_ref[f] * x0 + params_ref[8 + f] * x1,
                        params_ref[16 + f])
        z = z + params_ref[24 + f] * h

    # sigmoid(z) = 1 / (1 + exp(-z)): exp on the EUP slot, approximate
    # reciprocal on the EUP as well (keeps the saturated VALU slot free).
    e = jnp.exp(-z)
    o_ref[...] = pl.reciprocal(1.0 + e, approx=True)


def xor_model_forward(x, w1, b1, w2, b2, *, rows_per_tile=2048):
    """x: (B, 2) f32; w1: (2, 8); b1: (8,); w2: (8, 1); b2: (1,).

    Weights are stored (in_features, out_features), i.e. transposed relative
    to torch.nn.Linear.weight, so semantics match y = x @ W + b.
    """
    x = jnp.asarray(x, jnp.float32)
    B = x.shape[0]

    # ---- tile selection: full (8,128) vregs, MiB-scale tiles ---------------
    rows_needed = _round_up(pl.cdiv(B, _LANE), _SUBLANE)          # >= 8
    r = max(_SUBLANE,
            min(_round_up(rows_per_tile, _SUBLANE), rows_needed))  # mult of 8
    rows_total = _round_up(rows_needed, r)                         # grid-even
    Bp = rows_total * _LANE
    grid = rows_total // r

    # ---- lay out x as (2, rows_total, 128) ---------------------------------
    x_t = x.T  # (2, B)
    if Bp != B:
        x_t = jnp.pad(x_t, ((0, 0), (0, Bp - B)))
    x_t = x_t.reshape(2, rows_total, _LANE)

    # ---- pack params (with relu/bias folding) ------------------------------
    w1 = jnp.asarray(w1, jnp.float32).reshape(2, 8)
    b1 = jnp.asarray(b1, jnp.float32).reshape(8)
    w2 = jnp.asarray(w2, jnp.float32).reshape(8)
    b2 = jnp.asarray(b2, jnp.float32).reshape(())
    b2_eff = b2 + jnp.sum(w2 * b1)
    params = jnp.concatenate([
        w1[0], w1[1],        # 16
        -b1,                 # 8  (negated bias for the max() formulation)
        w2,                  # 8
        b2_eff.reshape(1),   # 1
    ])  # (33,)

    out_t = pl.pallas_call(
        xor_mlp_kernel,
        out_shape=jax.ShapeDtypeStruct((rows_total, _LANE), jnp.float32),
        grid_spec=pltpu.PrefetchScalarGridSpec(
            num_scalar_prefetch=1,            # packed params -> SMEM
            grid=(grid,),
            in_specs=[
                pl.BlockSpec((2, r, _LANE), lambda i, params: (0, i, 0)),
            ],
            out_specs=pl.BlockSpec((r, _LANE), lambda i, params: (i, 0)),
        ),
        compiler_params=pltpu.CompilerParams(
            # v7x: shard batch tiles across the two TensorCores.
            dimension_semantics=("parallel",),
        ),
    )(params, x_t)

    return out_t.reshape(Bp)[:B].reshape(B, 1)


def init_params(key):
    """Deterministic init mimicking torch.nn.Linear defaults (U(-1/sqrt(fan_in), +))."""
    k1, k2, k3, k4 = jax.random.split(key, 4)
    bound1 = 1.0 / jnp.sqrt(2.0)
    bound2 = 1.0 / jnp.sqrt(8.0)
    w1 = jax.random.uniform(k1, (2, 8), jnp.float32, -bound1, bound1)
    b1 = jax.random.uniform(k2, (8,), jnp.float32, -bound1, bound1)
    w2 = jax.random.uniform(k3, (8, 1), jnp.float32, -bound2, bound2)
    b2 = jax.random.uniform(k4, (1,), jnp.float32, -bound2, bound2)
    return w1, b1, w2, b2


def reference_forward(x, w1, b1, w2, b2):
    h = jnp.maximum(x @ w1 + b1, 0.0)
    return jax.nn.sigmoid(h @ w2 + b2)


if __name__ == "__main__":
    key = jax.random.PRNGKey(0)
    pkey, xkey = jax.random.split(key)
    w1, b1, w2, b2 = init_params(pkey)

    # Classic XOR inputs plus a few random rows; batch=8, features=2.
    xor_pts = jnp.array([[0.0, 0.0], [0.0, 1.0], [1.0, 0.0], [1.0, 1.0]],
                        jnp.float32)
    extra = jax.random.uniform(xkey, (4, 2), jnp.float32)
    x = jnp.concatenate([xor_pts, extra], axis=0)  # (8, 2)

    out = jax.block_until_ready(xor_model_forward(x, w1, b1, w2, b2))

    ref = reference_forward(x, w1, b1, w2, b2)
    assert out.shape == (8, 1), out.shape
    # Approximate (EUP) reciprocal in the sigmoid -> slightly looser tolerance.
    assert jnp.allclose(out, ref, atol=5e-3, rtol=5e-3), (out, ref)

    print("KERNEL_OK")
</pallas_src>

<mosaic_0001>
module attributes {stable_mosaic.version = 11 : i64} {
  func.func @xor_mlp_kernel(%arg0: i32, %arg1: memref<33xf32, #tpu.memory_space<smem>>, %arg2: memref<2x8x128xf32, #tpu.memory_space<vmem>>, %arg3: memref<8x128xf32, #tpu.memory_space<vmem>>) attributes {dimension_semantics = [#tpu.dimension_semantics<parallel>], iteration_bounds = array<i64: 1>, scalar_prefetch = 1 : i64, scratch_operands = 0 : i64, tpu.core_type = #tpu.core_type<tc>, window_params = [{transform_indices = @transform_0, window_bounds = array<i64: 2, 8, 128>}, {transform_indices = @transform_1, window_bounds = array<i64: 8, 128>}]} {
    %c0 = arith.constant 0 : index
    %c0_0 = arith.constant 0 : index
    %c0_1 = arith.constant 0 : index
    %0 = vector.load %arg2[%c0, %c0_0, %c0_1] : memref<2x8x128xf32, #tpu.memory_space<vmem>>, vector<1x8x128xf32>
    %1 = vector.shape_cast %0 : vector<1x8x128xf32> to vector<8x128xf32>
    %c1 = arith.constant 1 : index
    %c0_2 = arith.constant 0 : index
    %c0_3 = arith.constant 0 : index
    %2 = vector.load %arg2[%c1, %c0_2, %c0_3] : memref<2x8x128xf32, #tpu.memory_space<vmem>>, vector<1x8x128xf32>
    %3 = vector.shape_cast %2 : vector<1x8x128xf32> to vector<8x128xf32>
    %c32 = arith.constant 32 : index
    %4 = memref.load %arg1[%c32] : memref<33xf32, #tpu.memory_space<smem>>
    %5 = vector.broadcast %4 : f32 to vector<8x128xf32>
    %c0_4 = arith.constant 0 : index
    %6 = memref.load %arg1[%c0_4] : memref<33xf32, #tpu.memory_space<smem>>
    %7 = vector.broadcast %6 : f32 to vector<8x128xf32>
    %8 = arith.mulf %7, %1 : vector<8x128xf32>
    %c8 = arith.constant 8 : index
    %9 = memref.load %arg1[%c8] : memref<33xf32, #tpu.memory_space<smem>>
    %10 = vector.broadcast %9 : f32 to vector<8x128xf32>
    %11 = arith.mulf %10, %3 : vector<8x128xf32>
    %12 = arith.addf %8, %11 : vector<8x128xf32>
    %c16 = arith.constant 16 : index
    %13 = memref.load %arg1[%c16] : memref<33xf32, #tpu.memory_space<smem>>
    %14 = vector.broadcast %13 : f32 to vector<8x128xf32>
    %15 = arith.maximumf %12, %14 : vector<8x128xf32>
    %c24 = arith.constant 24 : index
    %16 = memref.load %arg1[%c24] : memref<33xf32, #tpu.memory_space<smem>>
    %17 = vector.broadcast %16 : f32 to vector<8x128xf32>
    %18 = arith.mulf %17, %15 : vector<8x128xf32>
    %19 = arith.addf %5, %18 : vector<8x128xf32>
    %c1_5 = arith.constant 1 : index
    %20 = memref.load %arg1[%c1_5] : memref<33xf32, #tpu.memory_space<smem>>
    %21 = vector.broadcast %20 : f32 to vector<8x128xf32>
    %22 = arith.mulf %21, %1 : vector<8x128xf32>
    %c9 = arith.constant 9 : index
    %23 = memref.load %arg1[%c9] : memref<33xf32, #tpu.memory_space<smem>>
    %24 = vector.broadcast %23 : f32 to vector<8x128xf32>
    %25 = arith.mulf %24, %3 : vector<8x128xf32>
    %26 = arith.addf %22, %25 : vector<8x128xf32>
    %c17 = arith.constant 17 : index
    %27 = memref.load %arg1[%c17] : memref<33xf32, #tpu.memory_space<smem>>
    %28 = vector.broadcast %27 : f32 to vector<8x128xf32>
    %29 = arith.maximumf %26, %28 : vector<8x128xf32>
    %c25 = arith.constant 25 : index
    %30 = memref.load %arg1[%c25] : memref<33xf32, #tpu.memory_space<smem>>
    %31 = vector.broadcast %30 : f32 to vector<8x128xf32>
    %32 = arith.mulf %31, %29 : vector<8x128xf32>
    %33 = arith.addf %19, %32 : vector<8x128xf32>
    %c2 = arith.constant 2 : index
    %34 = memref.load %arg1[%c2] : memref<33xf32, #tpu.memory_space<smem>>
    %35 = vector.broadcast %34 : f32 to vector<8x128xf32>
    %36 = arith.mulf %35, %1 : vector<8x128xf32>
    %c10 = arith.constant 10 : index
    %37 = memref.load %arg1[%c10] : memref<33xf32, #tpu.memory_space<smem>>
    %38 = vector.broadcast %37 : f32 to vector<8x128xf32>
    %39 = arith.mulf %38, %3 : vector<8x128xf32>
    %40 = arith.addf %36, %39 : vector<8x128xf32>
    %c18 = arith.constant 18 : index
    %41 = memref.load %arg1[%c18] : memref<33xf32, #tpu.memory_space<smem>>
    %42 = vector.broadcast %41 : f32 to vector<8x128xf32>
    %43 = arith.maximumf %40, %42 : vector<8x128xf32>
    %c26 = arith.constant 26 : index
    %44 = memref.load %arg1[%c26] : memref<33xf32, #tpu.memory_space<smem>>
    %45 = vector.broadcast %44 : f32 to vector<8x128xf32>
    %46 = arith.mulf %45, %43 : vector<8x128xf32>
    %47 = arith.addf %33, %46 : vector<8x128xf32>
    %c3 = arith.constant 3 : index
    %48 = memref.load %arg1[%c3] : memref<33xf32, #tpu.memory_space<smem>>
    %49 = vector.broadcast %48 : f32 to vector<8x128xf32>
    %50 = arith.mulf %49, %1 : vector<8x128xf32>
    %c11 = arith.constant 11 : index
    %51 = memref.load %arg1[%c11] : memref<33xf32, #tpu.memory_space<smem>>
    %52 = vector.broadcast %51 : f32 to vector<8x128xf32>
    %53 = arith.mulf %52, %3 : vector<8x128xf32>
    %54 = arith.addf %50, %53 : vector<8x128xf32>
    %c19 = arith.constant 19 : index
    %55 = memref.load %arg1[%c19] : memref<33xf32, #tpu.memory_space<smem>>
    %56 = vector.broadcast %55 : f32 to vector<8x128xf32>
    %57 = arith.maximumf %54, %56 : vector<8x128xf32>
    %c27 = arith.constant 27 : index
    %58 = memref.load %arg1[%c27] : memref<33xf32, #tpu.memory_space<smem>>
    %59 = vector.broadcast %58 : f32 to vector<8x128xf32>
    %60 = arith.mulf %59, %57 : vector<8x128xf32>
    %61 = arith.addf %47, %60 : vector<8x128xf32>
    %c4 = arith.constant 4 : index
    %62 = memref.load %arg1[%c4] : memref<33xf32, #tpu.memory_space<smem>>
    %63 = vector.broadcast %62 : f32 to vector<8x128xf32>
    %64 = arith.mulf %63, %1 : vector<8x128xf32>
    %c12 = arith.constant 12 : index
    %65 = memref.load %arg1[%c12] : memref<33xf32, #tpu.memory_space<smem>>
    %66 = vector.broadcast %65 : f32 to vector<8x128xf32>
    %67 = arith.mulf %66, %3 : vector<8x128xf32>
    %68 = arith.addf %64, %67 : vector<8x128xf32>
    %c20 = arith.constant 20 : index
    %69 = memref.load %arg1[%c20] : memref<33xf32, #tpu.memory_space<smem>>
    %70 = vector.broadcast %69 : f32 to vector<8x128xf32>
    %71 = arith.maximumf %68, %70 : vector<8x128xf32>
    %c28 = arith.constant 28 : index
    %72 = memref.load %arg1[%c28] : memref<33xf32, #tpu.memory_space<smem>>
    %73 = vector.broadcast %72 : f32 to vector<8x128xf32>
    %74 = arith.mulf %73, %71 : vector<8x128xf32>
    %75 = arith.addf %61, %74 : vector<8x128xf32>
    %c5 = arith.constant 5 : index
    %76 = memref.load %arg1[%c5] : memref<33xf32, #tpu.memory_space<smem>>
    %77 = vector.broadcast %76 : f32 to vector<8x128xf32>
    %78 = arith.mulf %77, %1 : vector<8x128xf32>
    %c13 = arith.constant 13 : index
    %79 = memref.load %arg1[%c13] : memref<33xf32, #tpu.memory_space<smem>>
    %80 = vector.broadcast %79 : f32 to vector<8x128xf32>
    %81 = arith.mulf %80, %3 : vector<8x128xf32>
    %82 = arith.addf %78, %81 : vector<8x128xf32>
    %c21 = arith.constant 21 : index
    %83 = memref.load %arg1[%c21] : memref<33xf32, #tpu.memory_space<smem>>
    %84 = vector.broadcast %83 : f32 to vector<8x128xf32>
    %85 = arith.maximumf %82, %84 : vector<8x128xf32>
    %c29 = arith.constant 29 : index
    %86 = memref.load %arg1[%c29] : memref<33xf32, #tpu.memory_space<smem>>
    %87 = vector.broadcast %86 : f32 to vector<8x128xf32>
    %88 = arith.mulf %87, %85 : vector<8x128xf32>
    %89 = arith.addf %75, %88 : vector<8x128xf32>
    %c6 = arith.constant 6 : index
    %90 = memref.load %arg1[%c6] : memref<33xf32, #tpu.memory_space<smem>>
    %91 = vector.broadcast %90 : f32 to vector<8x128xf32>
    %92 = arith.mulf %91, %1 : vector<8x128xf32>
    %c14 = arith.constant 14 : index
    %93 = memref.load %arg1[%c14] : memref<33xf32, #tpu.memory_space<smem>>
    %94 = vector.broadcast %93 : f32 to vector<8x128xf32>
    %95 = arith.mulf %94, %3 : vector<8x128xf32>
    %96 = arith.addf %92, %95 : vector<8x128xf32>
    %c22 = arith.constant 22 : index
    %97 = memref.load %arg1[%c22] : memref<33xf32, #tpu.memory_space<smem>>
    %98 = vector.broadcast %97 : f32 to vector<8x128xf32>
    %99 = arith.maximumf %96, %98 : vector<8x128xf32>
    %c30 = arith.constant 30 : index
    %100 = memref.load %arg1[%c30] : memref<33xf32, #tpu.memory_space<smem>>
    %101 = vector.broadcast %100 : f32 to vector<8x128xf32>
    %102 = arith.mulf %101, %99 : vector<8x128xf32>
    %103 = arith.addf %89, %102 : vector<8x128xf32>
    %c7 = arith.constant 7 : index
    %104 = memref.load %arg1[%c7] : memref<33xf32, #tpu.memory_space<smem>>
    %105 = vector.broadcast %104 : f32 to vector<8x128xf32>
    %106 = arith.mulf %105, %1 : vector<8x128xf32>
    %c15 = arith.constant 15 : index
    %107 = memref.load %arg1[%c15] : memref<33xf32, #tpu.memory_space<smem>>
    %108 = vector.broadcast %107 : f32 to vector<8x128xf32>
    %109 = arith.mulf %108, %3 : vector<8x128xf32>
    %110 = arith.addf %106, %109 : vector<8x128xf32>
    %c23 = arith.constant 23 : index
    %111 = memref.load %arg1[%c23] : memref<33xf32, #tpu.memory_space<smem>>
    %112 = vector.broadcast %111 : f32 to vector<8x128xf32>
    %113 = arith.maximumf %110, %112 : vector<8x128xf32>
    %c31 = arith.constant 31 : index
    %114 = memref.load %arg1[%c31] : memref<33xf32, #tpu.memory_space<smem>>
    %115 = vector.broadcast %114 : f32 to vector<8x128xf32>
    %116 = arith.mulf %115, %113 : vector<8x128xf32>
    %117 = arith.addf %103, %116 : vector<8x128xf32>
    %cst = arith.constant 0.000000e+00 : f32
    %118 = vector.broadcast %cst : f32 to vector<8x128xf32>
    %119 = arith.subf %118, %117 : vector<8x128xf32>
    %120 = math.exp %119 : vector<8x128xf32>
    %cst_6 = arith.constant 1.000000e+00 : f32
    %121 = vector.broadcast %cst_6 : f32 to vector<8x128xf32>
    %122 = arith.addf %121, %120 : vector<8x128xf32>
    %123 = tpu.reciprocal %122 {approx = true} : vector<8x128xf32> -> vector<8x128xf32>
    %c0_7 = arith.constant 0 : index
    %c0_8 = arith.constant 0 : index
    %124 = vector.load %arg3[%c0_7, %c0_8] : memref<8x128xf32, #tpu.memory_space<vmem>>, vector<8x128xf32>
    tpu.vector_store %arg3[%c0_7, %c0_8], %123 {strides = array<i32>} : memref<8x128xf32, #tpu.memory_space<vmem>>, vector<8x128xf32>,
    return
  }
  func.func @transform_0(%arg0: i32, %arg1: memref<33xf32, #tpu.memory_space<smem>>) -> (i32, i32, i32) {
    %c0_i32 = arith.constant 0 : i32
    %c0_i32_0 = arith.constant 0 : i32
    %c0_i32_1 = arith.constant 0 : i32
    return %c0_i32, %arg0, %c0_i32_0 : i32, i32, i32
  }
  func.func @transform_1(%arg0: i32, %arg1: memref<33xf32, #tpu.memory_space<smem>>) -> (i32, i32) {
    %c0_i32 = arith.constant 0 : i32
    %c0_i32_0 = arith.constant 0 : i32
    return %arg0, %c0_i32 : i32, i32
  }
}

</mosaic_0001>

<bundles_post_ra>
// kernel: tpu_custom_call.1
= control target key start
LH: loop header
LB: loop body
LE: loop exit
PB: predicated region body
PF: predicated region fallthrough
CT: control target
= control target key end

     0   :  { %s424_s0 = inlined_call_operand.hbm [shape: f32[33], index: 0, kind: input, shape index: {}]   ;;  %s425_s1 = inlined_call_operand.hbm [shape: f32[2,8,128], index: 1, kind: input, shape index: {}]   ;;  %s426_s2 = inlined_call_operand.hbm [shape: f32[8,128], index: 2, kind: output, shape index: {}]  }
   0x1   :  { %s207_s11 = scalar_lea.hbm %s424_s0, 16 }
   0x2   :  { %p208_p0 = scmp.ne.s32.totalorder %s424_s0, %s207_s11  ;;  %p211_p1 = scmp.lt.u32.totalorder %s207_s11, %s424_s0 }
   0x4   :  { %p213_p2 = pnand %p211_p1, %p208_p0 }
   0x6   :  { %216 = shalt.err (!%p213_p2)  }
   0x7   :  { %s267_s16 = smov [#allocation3]  }
   0x8   :  { %8 = dma.hbm_to_smem %s424_s0, 16, %s267_s16, [#allocation2] }
   0x9   :  { %261 = dma.done.wait [#allocation2], 16 }
   0xa   :  { %262 = vsyncadd [#allocation2], 4294967280 }
   0xb   :  { %10 = sfence }
   0xc   :  { %11 = vsyncpa [#allocation5], 0 }
   0xd   :  { %12 = vsyncpa [#allocation6], 0  ;;  %s268_s19 = smov [#allocation4]   ;;  %s217_s23 = scalar_lea.hbm %s425_s1, 256 }
   0xe   :  { %s18_s20 = sshll.u32 %s268_s19, 4  ;;  %p218_p3 = scmp.ne.s32.totalorder %s425_s1, %s217_s23  ;;  %s19_s20 = int_to_ptr.vmem [resolvable:$true] %s18_s20 }
   0xf   :  { %p221_p4 = scmp.lt.u32.totalorder %s217_s23, %s425_s1 }
  0x11   :  { %p223_p5 = pnand %p221_p4, %p218_p3 }
  0x13   :  { %226 = shalt.err (!%p223_p5)
}
  0x14   :  { %s227_s0 = scalar_lea.vmem %s19_s20, 256  ;;  %p232_p7 = scmp.lt.s32.totalorder %s19_s20, %s19_s20 }
  0x15   :  { %p228_p6 = scmp.ne.s32.totalorder %s19_s20, %s227_s0  ;;  %p233_p8 = scmp.lt.s32.totalorder %s227_s0, %s227_s0 }
  0x17   :  { %p234_p9 = por %p233_p8, %p232_p7 }
  0x19   :  { %p235_p10 = pnand %p234_p9, %p228_p6 }
  0x1b   :  { %238 = shalt.err (!%p235_p10)
}
  0x1c   :  { %s269_s28 = smov 128   ;;  %s270_s29 = smov 8  }
  0x1d   :  { %24 = dma.hbm_to_vmem [thread:$0]  %s425_s1, 256, %s19_s20, [#allocation5], %s269_s28, %s269_s28, %s270_s29  }
  0x1e   :  { %263 = dma.done.wait [#allocation5], 256  }
  0x1f   :  { %264 = vsyncadd [#allocation5], 4294967040  ;;  %s311_s4 = sld [smem:[#allocation3 + $0x20]]  ;;  %s170_s9 = sld [smem:[#allocation3 + $0x1]]  ;;  %v325_v0 = vld [vmem:[#allocation4] sm:$0xff]  ;;  %v327_v1 = vld [vmem:[#allocation4 + $0x8] sm:$0xff] }
  0x20   :  { %s33_s5 = sld [smem:[#allocation3]]  ;;  %s171_s10 = sld [smem:[#allocation3 + $0x9]] }
  0x21   :  { %s167_s6 = sld [smem:[#allocation3 + $0x8]]  ;;  %s317_s11 = sld [smem:[#allocation3 + $0x11]] }
  0x22   :  { %s313_s7 = sld [smem:[#allocation3 + $0x10]]  ;;  %s319_s12 = sld [smem:[#allocation3 + $0x19]] }
  0x23   :  { %s315_s8 = sld [smem:[#allocation3 + $0x18]]  ;;  %s174_s13 = sld [smem:[#allocation3 + $0x2]] }
  0x24   :  { %s321_s14 = sld [smem:[#allocation3 + $0xa]]  ;;  %s331_s16 = sld [smem:[#allocation3 + $0x3]] }
  0x25   :  { %s323_s1 = sld [smem:[#allocation3 + $0x12]]  ;;  %s334_s17 = sld [smem:[#allocation3 + $0xb]]  ;;  %v48_v6 = vstv %s170_s9  ;;  %v32_v10 = vstv %s311_s4 }
  0x26   :  { %v34_v2 = vstv %s33_s5  ;;  %s329_s15 = sld [smem:[#allocation3 + $0x1a]]  ;;  %s336_s18 = sld [smem:[#allocation3 + $0x13]]  ;;  %v49_v8 = vmul.f32 %v48_v6, %v325_v0  ;;  %v51_v9 = vstv %s171_s10 }
  0x27   :  { %v35_v3 = vmul.f32 %v34_v2, %v325_v0  ;;  %v37_v4 = vstv %s167_s6  ;;  %s339_s19 = sld [smem:[#allocation3 + $0x1b]]  ;;  %s341_s20 = sld [smem:[#allocation3 + $0x4]]  ;;  %v52_v12 = vmul.f32 %v51_v9, %v327_v1  ;;  %v55_v15 = vstv %s317_s11 }
  0x28   :  { %v38_v5 = vmul.f32 %v37_v4, %v327_v1  ;;  %v41_v7 = vstv %s313_s7  ;;  %s345_s21 = sld [smem:[#allocation3 + $0xc]]  ;;  %s351_s23 = sld [smem:[#allocation3 + $0x5]]  ;;  %v58_v20 = vstv %s319_s12 }
  0x29   :  { %s347_s22 = sld [smem:[#allocation3 + $0x14]]  ;;  %v62_v13 = vstv %s174_s13  ;;  %v44_v14 = vstv %s315_s8  ;;  %s359_s25 = sld [smem:[#allocation3 + $0xd]]  ;;  %v53_v19 = vadd.f32 %v52_v12, %v49_v8 }
  0x2a   :  { %v39_v11 = vadd.f32 %v38_v5, %v35_v3  ;;  %v63_v16 = vmul.f32 %v62_v13, %v325_v0  ;;  %v65_v17 = vstv %s321_s14  ;;  %s357_s24 = sld [smem:[#allocation3 + $0x1c]]  ;;  %s363_s26 = sld [smem:[#allocation3 + $0x15]]  ;;  %v76_v24 = vstv %s331_s16 }
  0x2b   :  { %v66_v21 = vmul.f32 %v65_v17, %v327_v1  ;;  %s365_s27 = sld [smem:[#allocation3 + $0x6]]  ;;  %v69_v22 = vstv %s323_s1  ;;  %v79_v25 = vstv %s334_s17  ;;  %s371_s0 = sld [smem:[#allocation3 + $0x1d]]  ;;  %v56_v27 = vmax.f32 %v53_v19, %v55_v15 }
  0x2c   :  { %v42_v18 = vmax.f32 %v39_v11, %v41_v7  ;;  %v72_v23 = vstv %s329_s15  ;;  %v77_v29 = vmul.f32 %v76_v24, %v325_v0  ;;  %s374_s28 = sld [smem:[#allocation3 + $0xe]]  ;;  %s376_s29 = sld [smem:[#allocation3 + $0x7]]  ;;  %v80_v30 = vmul.f32 %v79_v25, %v327_v1 }
  0x2d   :  { %v67_v28 = vadd.f32 %v66_v21, %v63_v16  ;;  %v83_v31 = vstv %s336_s18  ;;  %v90_v32 = vstv %s341_s20  ;;  %v59_v35 = vmul.f32 %v58_v20, %v56_v27  ;;  %s383_s30 = sld [smem:[#allocation3 + $0x16]]  ;;  %s385_s3 = sld [smem:[#allocation3 + $0xf]] }
  0x2e   :  { %v45_v26 = vmul.f32 %v44_v14, %v42_v18  ;;  %v93_v33 = vstv %s345_s21  ;;  %v91_v37 = vmul.f32 %v90_v32, %v325_v0  ;;  %v81_v38 = vadd.f32 %v80_v30, %v77_v29  ;;  %s392_s4 = sld [smem:[#allocation3 + $0x1e]]  ;;  %s394_s5 = sld [smem:[#allocation3 + $0x17]] }
  0x2f   :  { %v70_v36 = vmax.f32 %v67_v28, %v69_v22  ;;  %v86_v39 = vstv %s339_s19  ;;  %v94_v40 = vmul.f32 %v93_v33, %v327_v1  ;;  %v97_v41 = vstv %s347_s22  ;;  %s197_s6 = sld [smem:[#allocation3 + $0x1f]]  ;;  %s271_s7 = smov [#allocation7]  }
  0x30   :  { %v46_v34 = vadd.f32 %v45_v26, %v32_v10  ;;  %v104_v44 = vstv %s351_s23  ;;  %v107_v45 = vstv %s359_s25  ;;  %v84_v46 = vmax.f32 %v81_v38, %v83_v31  ;;  %s157_s8 = sshll.u32 %s271_s7, 4  ;;  %s158_s8 = int_to_ptr.vmem [resolvable:$true] %s157_s8 }
  0x31   :  { %v73_v43 = vmul.f32 %v72_v23, %v70_v36  ;;  %v95_v47 = vadd.f32 %v94_v40, %v91_v37  ;;  %v105_v48 = vmul.f32 %v104_v44, %v325_v0  ;;  %v108_v49 = vmul.f32 %v107_v45, %v327_v1  ;;  %s239_s9 = scalar_lea.vmem %s158_s8, 128  ;;  %p244_p12 = scmp.lt.s32.totalorder %s158_s8, %s158_s8 }
  0x32   :  { %v60_v42 = vadd.f32 %v59_v35, %v46_v34  ;;  %v100_v51 = vstv %s357_s24  ;;  %v111_v52 = vstv %s363_s26  ;;  %v118_v53 = vstv %s365_s27  ;;  %p240_p11 = scmp.ne.s32.totalorder %s158_s8, %s239_s9  ;;  %p245_p13 = scmp.lt.s32.totalorder %s239_s9, %s239_s9 }
  0x33   :  { %v87_v54 = vmul.f32 %v86_v39, %v84_v46  ;;  %v98_v55 = vmax.f32 %v95_v47, %v97_v41  ;;  %v109_v56 = vadd.f32 %v108_v49, %v105_v48  ;;  %v119_v57 = vmul.f32 %v118_v53, %v325_v0 }
  0x34   :  { %v74_v50 = vadd.f32 %v73_v43, %v60_v42  ;;  %v114_v58 = vstv %s371_s0  ;;  %v121_v59 = vstv %s374_s28  ;;  %v132_v60 = vstv %s376_s29  ;;  %p246_p0 = por %p245_p13, %p244_p12 }
  0x35   :  { %v101_v62 = vmul.f32 %v100_v51, %v98_v55  ;;  %v112_v63 = vmax.f32 %v109_v56, %v111_v52  ;;  %v122_v2 = vmul.f32 %v121_v59, %v327_v1  ;;  %v125_v3 = vstv %s383_s30 }
  0x36   :  { %v88_v61 = vadd.f32 %v87_v54, %v74_v50  ;;  %v133_v4 = vmul.f32 %v132_v60, %v325_v0  ;;  %v135_v5 = vstv %s385_s3  ;;  %v128_v10 = vstv %s392_s4  ;;  %p247_p1 = pnand %p246_p0, %p240_p11 }
  0x37   :  { %v115_v7 = vmul.f32 %v114_v58, %v112_v63  ;;  %v123_v8 = vadd.f32 %v122_v2, %v119_v57  ;;  %v136_v9 = vmul.f32 %v135_v5, %v327_v1  ;;  %v139_v11 = vstv %s394_s5 }
  0x38   :  { %v102_v6 = vadd.f32 %v101_v62, %v88_v61  ;;  %v142_v15 = vstv %s197_s6 }
  0x39   :  { %v126_v13 = vmax.f32 %v123_v8, %v125_v3  ;;  %v137_v14 = vadd.f32 %v136_v9, %v133_v4 }
  0x3a   :  { %v116_v12 = vadd.f32 %v115_v7, %v102_v6 }
  0x3b   :  { %v129_v16 = vmul.f32 %v128_v10, %v126_v13  ;;  %v140_v17 = vmax.f32 %v137_v14, %v139_v11 }
  0x3d   :  { %v130_v18 = vadd.f32 %v129_v16, %v116_v12  ;;  %v143_v19 = vmul.f32 %v142_v15, %v140_v17 }
  0x3f   :  { %v144_v20 = vadd.f32 %v143_v19, %v130_v18 }
  0x41   :  { %v145_v21 = vsub.f32 0.0, %v144_v20 }
  0x43   :  { %v146_v22 = vmul.f32 1.442695, %v145_v21 }
  0x45   :  { %203 = vpow2.f32 %v146_v22 }
  0x4f   :  { %v204_v0 = vpop.eup %203 }
  0x50   :  { %v148_v23 = vadd.f32 1.0, %v204_v0 }
  0x52   :  { %205 = vrcp.f32 %v148_v23 }
  0x5c   :  { %v206_v1 = vpop.eup %205 }
  0x5d   :  { %150 = vst [vmem:[#allocation7] sm:$0xff] %v206_v1 }
  0x5e   :  { %250 = shalt.err (!%p247_p1)
}
  0x5f   :  { %s251_s12 = scalar_lea.hbm %s426_s2, 128 }
  0x60   :  { %p252_p2 = scmp.ne.s32.totalorder %s426_s2, %s251_s12  ;;  %p255_p3 = scmp.lt.u32.totalorder %s251_s12, %s426_s2 }
  0x62   :  { %p257_p4 = pnand %p255_p3, %p252_p2 }
  0x64   :  { %260 = shalt.err (!%p257_p4)
}
  0x65   :  { %160 = dma.vmem_to_hbm [thread:$0]  %s158_s8, 128, %s426_s2, [#allocation6]  }
  0x66   :  { %265 = dma.done.wait [#allocation6], 128  }
  0x67   :  { %266 = vsyncadd [#allocation6], 4294967168 }
  0x68   :  { %164 = vsyncpa [#allocation5], 1 }
  0x69   :  { %165 = vsyncpa [#allocation6], 1 }

</bundles_post_ra>
